<compile_context>
chip_gen: v7x
topology: tpu7x:2x2x1
jax: 0.10.0
libtpu: 0.0.40
codegen_flags: <defaults>
</compile_context>

<pallas_src>
import functools

import jax
import jax.numpy as jnp
from jax.experimental import pallas as pl
from jax.experimental.pallas import tpu as pltpu

LANE = 128
SUBLANE = 8


def _round_up(x, m):
    return ((x + m - 1) // m) * m


def _pad2d(a, rows, cols):
    r, c = a.shape
    return jnp.pad(a, ((0, rows - r), (0, cols - c)))


def _vae_kernel(
    x_ref, eps_ref,
    w_ih_ref, b_ih_ref,
    w_mulv_ref, b_mulv_ref,
    w_lh_ref, b_lh_ref,
    w_ho_ref, b_ho_ref,
    xprime_ref, mulv_ref,
    *, compute_dtype, latent_size, packed_head,
):
    x = x_ref[...]
    eps = eps_ref[...].astype(jnp.float32)

    # encode: h = tanh(x @ W_ih + b_ih)   (MXU in compute_dtype, f32 accumulate;
    # all elementwise math in f32 -- v5e-safe)
    h = jnp.tanh(
        jnp.dot(x.astype(compute_dtype), w_ih_ref[...],
                preferred_element_type=jnp.float32)
        + b_ih_ref[...]
    )

    # fused mu/logvar head, kept in f32 (small matmul; protects logvar -> exp()).
    mulv = (
        jnp.dot(h, w_mulv_ref[...], preferred_element_type=jnp.float32)
        + b_mulv_ref[...]
    )

    if packed_head:
        # mu in lanes [0, latent), logvar in lanes [latent, 2*latent).
        # Align logvar under mu with a lane roll (XLU slot, nearly free) and
        # zero the non-logvar lanes so exp() sees exact zeros there.
        width = mulv.shape[-1]
        rolled = pltpu.roll(mulv, width - latent_size, axis=1)
        lane = jax.lax.broadcasted_iota(jnp.int32, mulv.shape, dimension=1)
        logvar = jnp.where(lane < latent_size, rolled, 0.0)
        # Lanes >= latent of `mulv` hold junk in z, but eps is zero there and
        # the padded rows of W_lh are exactly zero, so the decode is unaffected.
        z = mulv + eps * jnp.exp(0.5 * logvar)
    else:
        lat_p = eps.shape[-1]
        mu = mulv[:, :lat_p]
        logvar = mulv[:, lat_p:]
        z = mu + eps * jnp.exp(0.5 * logvar)

    # decode: x' = sigmoid(tanh(z @ W_lh + b_lh) @ W_ho + b_ho)
    h2 = jnp.tanh(
        jnp.dot(z.astype(compute_dtype), w_lh_ref[...],
                preferred_element_type=jnp.float32)
        + b_lh_ref[...]
    )
    logits = (
        jnp.dot(h2.astype(compute_dtype), w_ho_ref[...],
                preferred_element_type=jnp.float32)
        + b_ho_ref[...]
    )

    xprime_ref[...] = jax.nn.sigmoid(logits).astype(xprime_ref.dtype)
    mulv_ref[...] = mulv.astype(mulv_ref.dtype)


def prepare_params(params, *, use_bf16=True):
    """One-time weight prep: pad to 128-lane multiples, cast, fuse mu/logvar head."""
    input_size, hidden_size = params["w_ih"].shape
    latent_size = params["w_hmu"].shape[1]

    in_p = _round_up(input_size, LANE)
    hid_p = _round_up(hidden_size, LANE)
    lat_p = _round_up(latent_size, LANE)
    packed_head = 2 * latent_size <= lat_p
    mulv_w = lat_p if packed_head else 2 * lat_p

    w_dtype = jnp.bfloat16 if use_bf16 else jnp.float32

    if packed_head:
        # Concatenate UNPADDED columns, then pad once -> 128-lane head.
        w_mulv = _pad2d(jnp.concatenate([params["w_hmu"], params["w_hlv"]], axis=1),
                        hid_p, mulv_w)
        b_mulv = _pad2d(jnp.concatenate([params["b_hmu"], params["b_hlv"]], axis=1),
                        1, mulv_w)
    else:
        w_mulv = jnp.concatenate(
            [_pad2d(params["w_hmu"], hid_p, lat_p),
             _pad2d(params["w_hlv"], hid_p, lat_p)], axis=1)
        b_mulv = jnp.concatenate(
            [_pad2d(params["b_hmu"], 1, lat_p),
             _pad2d(params["b_hlv"], 1, lat_p)], axis=1)

    return {
        "w_ih": _pad2d(params["w_ih"], in_p, hid_p).astype(w_dtype),
        "b_ih": _pad2d(params["b_ih"], 1, hid_p).astype(jnp.float32),
        "w_mulv": w_mulv.astype(jnp.float32),   # head stays f32 (feeds exp / KL)
        "b_mulv": b_mulv.astype(jnp.float32),
        "w_lh": _pad2d(params["w_lh"], lat_p, hid_p).astype(w_dtype),
        "b_lh": _pad2d(params["b_lh"], 1, hid_p).astype(jnp.float32),
        "w_ho": _pad2d(params["w_ho"], hid_p, in_p).astype(w_dtype),
        "b_ho": _pad2d(params["b_ho"], 1, in_p).astype(jnp.float32),
    }


def _pick_batch_tile(B, tile_b):
    if B >= 2 * tile_b:
        return tile_b
    if B >= 256:
        # Cap the tile so the grid has >= 2 steps: the "parallel" batch axis is
        # what lets the two v7x TensorCores split the work.
        return _round_up((B + 1) // 2, SUBLANE)
    return _round_up(B, SUBLANE)


@functools.partial(jax.jit, static_argnames=("use_bf16", "tile_b"))
def vae_forward_prepared(x, eps, prep, *, use_bf16=True, tile_b=512):
    """x: [B, input_size] f32, eps: [B, latent_size] f32, prep: prepare_params()."""
    B, input_size = x.shape
    latent_size = eps.shape[1]

    in_p, hid_p = prep["w_ih"].shape
    lat_p = prep["w_lh"].shape[0]
    mulv_w = prep["w_mulv"].shape[1]
    packed_head = (mulv_w == lat_p)

    act_dtype = jnp.bfloat16 if use_bf16 else jnp.float32
    out_dtype = jnp.bfloat16 if use_bf16 else jnp.float32

    tb = _pick_batch_tile(B, tile_b)
    b_p = _round_up(B, tb)
    grid = (b_p // tb,)

    # Cast BEFORE padding so the streamed HBM copies are half-size in bf16 mode.
    # This runs inside the same jit as the pallas_call, so it fuses into one op.
    x_p = _pad2d(x.astype(act_dtype), b_p, in_p)
    eps_p = _pad2d(eps.astype(act_dtype), b_p, lat_p)

    def btile(nfeat):
        # batch-tiled, lane-dense block (feature dim is a 128-multiple)
        return pl.BlockSpec((tb, nfeat), lambda b: (b, 0))

    def resident(arr):
        # constant block index -> weight stays VMEM-resident across the grid
        # TODO(synk): pipeline_mode=pl.Buffered(1) would reclaim the unused
        # second buffer for these constant blocks (minor VMEM hygiene).
        return pl.BlockSpec(arr.shape, lambda b: (0, 0))

    kernel = functools.partial(
        _vae_kernel,
        compute_dtype=act_dtype,
        latent_size=latent_size,
        packed_head=packed_head,
    )

    weights = (prep["w_ih"], prep["b_ih"], prep["w_mulv"], prep["b_mulv"],
               prep["w_lh"], prep["b_lh"], prep["w_ho"], prep["b_ho"])

    out_isize = 2 if use_bf16 else 4
    flops = 2 * b_p * (in_p * hid_p + hid_p * mulv_w + lat_p * hid_p + hid_p * in_p)
    transcendentals = b_p * (2 * hid_p + lat_p + in_p)
    bytes_accessed = (
        x_p.size * x_p.dtype.itemsize
        + eps_p.size * eps_p.dtype.itemsize
        + sum(a.size * a.dtype.itemsize for a in weights)
        + b_p * in_p * out_isize
        + b_p * mulv_w * 4
    )

    xp_pad, mulv_pad = pl.pallas_call(
        kernel,
        out_shape=(
            jax.ShapeDtypeStruct((b_p, in_p), out_dtype),       # x_prime (padded)
            jax.ShapeDtypeStruct((b_p, mulv_w), jnp.float32),   # [mu | logvar] (padded)
        ),
        grid=grid,
        in_specs=[
            btile(in_p), btile(lat_p),
            *(resident(w) for w in weights),
        ],
        out_specs=(btile(in_p), btile(mulv_w)),
        compiler_params=pltpu.CompilerParams(
            dimension_semantics=("parallel",),
            vmem_limit_bytes=32 * 1024 * 1024,
        ),
        cost_estimate=pl.CostEstimate(
            flops=flops,
            transcendentals=transcendentals,
            bytes_accessed=bytes_accessed,
        ),
    )(x_p, eps_p, *weights)

    # Strip padding; return f32 to match the PyTorch module's output dtype.
    x_prime = xp_pad[:B, :input_size].astype(jnp.float32)
    mu = mulv_pad[:B, :latent_size]
    lv_off = latent_size if packed_head else lat_p
    logvar = mulv_pad[:B, lv_off:lv_off + latent_size]
    return x_prime, mu, logvar


def vae_forward(x, eps, params, *, use_bf16=True, tile_b=512):
    """Convenience path (prepares weights per call). For repeated calls, hoist
    prepare_params() out and call vae_forward_prepared() directly."""
    prep = prepare_params(params, use_bf16=use_bf16)
    return vae_forward_prepared(x, eps, prep, use_bf16=use_bf16, tile_b=tile_b)


def init_params(key, input_size, hidden_size, latent_size):
    """Deterministic synthetic parameter init (weights stored [in, out])."""
    ks = jax.random.split(key, 10)

    def lin(k_w, k_b, fan_in, fan_out):
        scale = 1.0 / jnp.sqrt(fan_in)
        w = jax.random.uniform(k_w, (fan_in, fan_out), jnp.float32, -scale, scale)
        b = jax.random.uniform(k_b, (1, fan_out), jnp.float32, -scale, scale)
        return w, b

    w_ih, b_ih = lin(ks[0], ks[1], input_size, hidden_size)
    w_hmu, b_hmu = lin(ks[2], ks[3], hidden_size, latent_size)
    w_hlv, b_hlv = lin(ks[4], ks[5], hidden_size, latent_size)
    w_lh, b_lh = lin(ks[6], ks[7], latent_size, hidden_size)
    w_ho, b_ho = lin(ks[8], ks[9], hidden_size, input_size)

    return {
        "w_ih": w_ih, "b_ih": b_ih,
        "w_hmu": w_hmu, "b_hmu": b_hmu,
        "w_hlv": w_hlv, "b_hlv": b_hlv,
        "w_lh": w_lh, "b_lh": b_lh,
        "w_ho": w_ho, "b_ho": b_ho,
    }


def vae_forward_ref(x, eps, p):
    """Pure-JAX f32 reference matching the PyTorch forward semantics."""
    h = jnp.tanh(x @ p["w_ih"] + p["b_ih"])
    mu = h @ p["w_hmu"] + p["b_hmu"]
    logvar = h @ p["w_hlv"] + p["b_hlv"]
    z = mu + eps * jnp.exp(0.5 * logvar)
    h2 = jnp.tanh(z @ p["w_lh"] + p["b_lh"])
    x_prime = jax.nn.sigmoid(h2 @ p["w_ho"] + p["b_ho"])
    return x_prime, mu, logvar


def _check(params, prep, x, eps, *, use_bf16, atol, rtol):
    out = jax.block_until_ready(
        vae_forward_prepared(x, eps, prep, use_bf16=use_bf16))
    x_prime, mu, logvar = out
    xp_ref, mu_ref, lv_ref = vae_forward_ref(x, eps, params)
    assert x_prime.shape == xp_ref.shape
    assert mu.shape == mu_ref.shape
    assert logvar.shape == lv_ref.shape
    assert jnp.allclose(x_prime, xp_ref, atol=atol, rtol=rtol)
    assert jnp.allclose(mu, mu_ref, atol=atol, rtol=rtol)
    assert jnp.allclose(logvar, lv_ref, atol=atol, rtol=rtol)


if __name__ == "__main__":
    key = jax.random.PRNGKey(0)
    k_params, k_x, k_eps, k_x2, k_eps2, k_p3, k_x3, k_eps3 = jax.random.split(key, 8)

    # --- packed mu/logvar head (2*latent <= 128) ---
    input_size, hidden_size, latent_size = 64, 32, 16
    params = init_params(k_params, input_size, hidden_size, latent_size)
    prep_f32 = prepare_params(params, use_bf16=False)
    prep_bf16 = prepare_params(params, use_bf16=True)

    # small batch (grid=(1,)): f32 path tight, bf16 path loose
    batch = 8
    x = jax.random.uniform(k_x, (batch, input_size), jnp.float32)
    eps = jax.random.normal(k_eps, (batch, latent_size), jnp.float32)
    _check(params, prep_f32, x, eps, use_bf16=False, atol=2e-5, rtol=2e-5)
    _check(params, prep_bf16, x, eps, use_bf16=True, atol=5e-2, rtol=5e-2)

    # larger, odd, non-multiple batch: exercises padding + >=2 grid steps
    # (tile cap so both v7x TensorCores get a tile)
    batch2 = 521
    x2 = jax.random.uniform(k_x2, (batch2, input_size), jnp.float32)
    eps2 = jax.random.normal(k_eps2, (batch2, latent_size), jnp.float32)
    _check(params, prep_bf16, x2, eps2, use_bf16=True, atol=5e-2, rtol=5e-2)

    # --- non-packed head path (2*latent > 128) ---
    in3, hid3, lat3 = 50, 40, 72
    params3 = init_params(k_p3, in3, hid3, lat3)
    prep3 = prepare_params(params3, use_bf16=False)
    x3 = jax.random.uniform(k_x3, (16, in3), jnp.float32)
    eps3 = jax.random.normal(k_eps3, (16, lat3), jnp.float32)
    _check(params3, prep3, x3, eps3, use_bf16=False, atol=2e-5, rtol=2e-5)

    print("KERNEL_OK")
</pallas_src>

<mosaic_0001>
module attributes {stable_mosaic.version = 11 : i64} {
  func.func @_vae_kernel(%arg0: i32, %arg1: memref<8x128xf32, #tpu.memory_space<vmem>>, %arg2: memref<8x128xf32, #tpu.memory_space<vmem>>, %arg3: memref<128x128xf32, #tpu.memory_space<vmem>>, %arg4: memref<1x128xf32, #tpu.memory_space<vmem>>, %arg5: memref<128x128xf32, #tpu.memory_space<vmem>>, %arg6: memref<1x128xf32, #tpu.memory_space<vmem>>, %arg7: memref<128x128xf32, #tpu.memory_space<vmem>>, %arg8: memref<1x128xf32, #tpu.memory_space<vmem>>, %arg9: memref<128x128xf32, #tpu.memory_space<vmem>>, %arg10: memref<1x128xf32, #tpu.memory_space<vmem>>, %arg11: memref<8x128xf32, #tpu.memory_space<vmem>>, %arg12: memref<8x128xf32, #tpu.memory_space<vmem>>) attributes {dimension_semantics = [#tpu.dimension_semantics<parallel>], iteration_bounds = array<i64: 1>, scalar_prefetch = 0 : i64, scratch_operands = 0 : i64, tpu.core_type = #tpu.core_type<tc>, window_params = [{transform_indices = @transform_0, window_bounds = array<i64: 8, 128>}, {transform_indices = @transform_1, window_bounds = array<i64: 8, 128>}, {pipeline_mode = #tpu.pipeline_mode<synchronous>, transform_indices = @transform_2, window_bounds = array<i64: 128, 128>}, {pipeline_mode = #tpu.pipeline_mode<synchronous>, transform_indices = @transform_3, window_bounds = array<i64: 1, 128>}, {pipeline_mode = #tpu.pipeline_mode<synchronous>, transform_indices = @transform_4, window_bounds = array<i64: 128, 128>}, {pipeline_mode = #tpu.pipeline_mode<synchronous>, transform_indices = @transform_5, window_bounds = array<i64: 1, 128>}, {pipeline_mode = #tpu.pipeline_mode<synchronous>, transform_indices = @transform_6, window_bounds = array<i64: 128, 128>}, {pipeline_mode = #tpu.pipeline_mode<synchronous>, transform_indices = @transform_7, window_bounds = array<i64: 1, 128>}, {pipeline_mode = #tpu.pipeline_mode<synchronous>, transform_indices = @transform_8, window_bounds = array<i64: 128, 128>}, {pipeline_mode = #tpu.pipeline_mode<synchronous>, transform_indices = @transform_9, window_bounds = array<i64: 1, 128>}, {transform_indices = @transform_10, window_bounds = array<i64: 8, 128>}, {transform_indices = @transform_11, window_bounds = array<i64: 8, 128>}]} {
    %c0 = arith.constant 0 : index
    %c0_0 = arith.constant 0 : index
    %0 = vector.load %arg1[%c0, %c0_0] : memref<8x128xf32, #tpu.memory_space<vmem>>, vector<8x128xf32>
    %c0_1 = arith.constant 0 : index
    %c0_2 = arith.constant 0 : index
    %1 = vector.load %arg2[%c0_1, %c0_2] : memref<8x128xf32, #tpu.memory_space<vmem>>, vector<8x128xf32>
    %c0_3 = arith.constant 0 : index
    %c0_4 = arith.constant 0 : index
    %2 = vector.load %arg3[%c0_3, %c0_4] : memref<128x128xf32, #tpu.memory_space<vmem>>, vector<128x128xf32>
    %cst = arith.constant dense<0.000000e+00> : vector<8x128xf32>
    %3 = tpu.matmul %0, %2, %cst {dimension_numbers = #tpu.dot_dimension_numbers<[1], [0], [0], [1], [0, 0, 1, 1], [], []>} : vector<8x128xf32>, vector<128x128xf32>, vector<8x128xf32> -> vector<8x128xf32>
    %c0_5 = arith.constant 0 : index
    %c0_6 = arith.constant 0 : index
    %4 = vector.load %arg4[%c0_5, %c0_6] : memref<1x128xf32, #tpu.memory_space<vmem>>, vector<1x128xf32>
    %5 = vector.broadcast %4 : vector<1x128xf32> to vector<8x128xf32>
    %6 = arith.addf %3, %5 : vector<8x128xf32>
    %7 = math.tanh %6 : vector<8x128xf32>
    %c0_7 = arith.constant 0 : index
    %c0_8 = arith.constant 0 : index
    %8 = vector.load %arg5[%c0_7, %c0_8] : memref<128x128xf32, #tpu.memory_space<vmem>>, vector<128x128xf32>
    %cst_9 = arith.constant dense<0.000000e+00> : vector<8x128xf32>
    %9 = tpu.matmul %7, %8, %cst_9 {dimension_numbers = #tpu.dot_dimension_numbers<[1], [0], [0], [1], [0, 0, 1, 1], [], []>} : vector<8x128xf32>, vector<128x128xf32>, vector<8x128xf32> -> vector<8x128xf32>
    %c0_10 = arith.constant 0 : index
    %c0_11 = arith.constant 0 : index
    %10 = vector.load %arg6[%c0_10, %c0_11] : memref<1x128xf32, #tpu.memory_space<vmem>>, vector<1x128xf32>
    %11 = vector.broadcast %10 : vector<1x128xf32> to vector<8x128xf32>
    %12 = arith.addf %9, %11 : vector<8x128xf32>
    %c112_i32 = arith.constant 112 : i32
    %13 = tpu.dynamic_rotate %12 by %c112_i32 dim 1 : vector<8x128xf32>, i32 -> vector<8x128xf32>
    %14 = tpu.iota {dimensions = array<i32: 1>} : vector<8x128xi32>
    %c16_i32 = arith.constant 16 : i32
    %15 = vector.broadcast %c16_i32 : i32 to vector<8x128xi32>
    %16 = arith.cmpi slt, %14, %15 : vector<8x128xi32>
    %cst_12 = arith.constant 0.000000e+00 : f32
    %17 = vector.broadcast %cst_12 : f32 to vector<8x128xf32>
    %18 = arith.select %16, %13, %17 : vector<8x128xi1>, vector<8x128xf32>
    %cst_13 = arith.constant 5.000000e-01 : f32
    %19 = vector.broadcast %cst_13 : f32 to vector<8x128xf32>
    %20 = arith.mulf %19, %18 : vector<8x128xf32>
    %21 = math.exp %20 : vector<8x128xf32>
    %22 = arith.mulf %1, %21 : vector<8x128xf32>
    %23 = arith.addf %12, %22 : vector<8x128xf32>
    %c0_14 = arith.constant 0 : index
    %c0_15 = arith.constant 0 : index
    %24 = vector.load %arg7[%c0_14, %c0_15] : memref<128x128xf32, #tpu.memory_space<vmem>>, vector<128x128xf32>
    %cst_16 = arith.constant dense<0.000000e+00> : vector<8x128xf32>
    %25 = tpu.matmul %23, %24, %cst_16 {dimension_numbers = #tpu.dot_dimension_numbers<[1], [0], [0], [1], [0, 0, 1, 1], [], []>} : vector<8x128xf32>, vector<128x128xf32>, vector<8x128xf32> -> vector<8x128xf32>
    %c0_17 = arith.constant 0 : index
    %c0_18 = arith.constant 0 : index
    %26 = vector.load %arg8[%c0_17, %c0_18] : memref<1x128xf32, #tpu.memory_space<vmem>>, vector<1x128xf32>
    %27 = vector.broadcast %26 : vector<1x128xf32> to vector<8x128xf32>
    %28 = arith.addf %25, %27 : vector<8x128xf32>
    %29 = math.tanh %28 : vector<8x128xf32>
    %c0_19 = arith.constant 0 : index
    %c0_20 = arith.constant 0 : index
    %30 = vector.load %arg9[%c0_19, %c0_20] : memref<128x128xf32, #tpu.memory_space<vmem>>, vector<128x128xf32>
    %cst_21 = arith.constant dense<0.000000e+00> : vector<8x128xf32>
    %31 = tpu.matmul %29, %30, %cst_21 {dimension_numbers = #tpu.dot_dimension_numbers<[1], [0], [0], [1], [0, 0, 1, 1], [], []>} : vector<8x128xf32>, vector<128x128xf32>, vector<8x128xf32> -> vector<8x128xf32>
    %c0_22 = arith.constant 0 : index
    %c0_23 = arith.constant 0 : index
    %32 = vector.load %arg10[%c0_22, %c0_23] : memref<1x128xf32, #tpu.memory_space<vmem>>, vector<1x128xf32>
    %33 = vector.broadcast %32 : vector<1x128xf32> to vector<8x128xf32>
    %34 = arith.addf %31, %33 : vector<8x128xf32>
    %35 = arith.negf %34 : vector<8x128xf32>
    %36 = math.exp %35 : vector<8x128xf32>
    %cst_24 = arith.constant 1.000000e+00 : f32
    %37 = vector.broadcast %cst_24 : f32 to vector<8x128xf32>
    %38 = arith.addf %37, %36 : vector<8x128xf32>
    %39 = arith.divf %37, %38 : vector<8x128xf32>
    %c0_25 = arith.constant 0 : index
    %c0_26 = arith.constant 0 : index
    %40 = vector.load %arg11[%c0_25, %c0_26] : memref<8x128xf32, #tpu.memory_space<vmem>>, vector<8x128xf32>
    tpu.vector_store %arg11[%c0_25, %c0_26], %39 {strides = array<i32>} : memref<8x128xf32, #tpu.memory_space<vmem>>, vector<8x128xf32>,
    %c0_27 = arith.constant 0 : index
    %c0_28 = arith.constant 0 : index
    %41 = vector.load %arg12[%c0_27, %c0_28] : memref<8x128xf32, #tpu.memory_space<vmem>>, vector<8x128xf32>
    tpu.vector_store %arg12[%c0_27, %c0_28], %12 {strides = array<i32>} : memref<8x128xf32, #tpu.memory_space<vmem>>, vector<8x128xf32>,
    return
  }
  func.func @transform_0(%arg0: i32) -> (i32, i32) {
    %c0_i32 = arith.constant 0 : i32
    %c0_i32_0 = arith.constant 0 : i32
    return %arg0, %c0_i32 : i32, i32
  }
  func.func @transform_1(%arg0: i32) -> (i32, i32) {
    %c0_i32 = arith.constant 0 : i32
    %c0_i32_0 = arith.constant 0 : i32
    return %arg0, %c0_i32 : i32, i32
  }
  func.func @transform_2(%arg0: i32) -> (i32, i32) {
    %c0_i32 = arith.constant 0 : i32
    %c0_i32_0 = arith.constant 0 : i32
    %c0_i32_1 = arith.constant 0 : i32
    return %c0_i32, %c0_i32_0 : i32, i32
  }
  func.func @transform_3(%arg0: i32) -> (i32, i32) {
    %c0_i32 = arith.constant 0 : i32
    %c0_i32_0 = arith.constant 0 : i32
    %c0_i32_1 = arith.constant 0 : i32
    return %c0_i32, %c0_i32_0 : i32, i32
  }
  func.func @transform_4(%arg0: i32) -> (i32, i32) {
    %c0_i32 = arith.constant 0 : i32
    %c0_i32_0 = arith.constant 0 : i32
    %c0_i32_1 = arith.constant 0 : i32
    return %c0_i32, %c0_i32_0 : i32, i32
  }
  func.func @transform_5(%arg0: i32) -> (i32, i32) {
    %c0_i32 = arith.constant 0 : i32
    %c0_i32_0 = arith.constant 0 : i32
    %c0_i32_1 = arith.constant 0 : i32
    return %c0_i32, %c0_i32_0 : i32, i32
  }
  func.func @transform_6(%arg0: i32) -> (i32, i32) {
    %c0_i32 = arith.constant 0 : i32
    %c0_i32_0 = arith.constant 0 : i32
    %c0_i32_1 = arith.constant 0 : i32
    return %c0_i32, %c0_i32_0 : i32, i32
  }
  func.func @transform_7(%arg0: i32) -> (i32, i32) {
    %c0_i32 = arith.constant 0 : i32
    %c0_i32_0 = arith.constant 0 : i32
    %c0_i32_1 = arith.constant 0 : i32
    return %c0_i32, %c0_i32_0 : i32, i32
  }
  func.func @transform_8(%arg0: i32) -> (i32, i32) {
    %c0_i32 = arith.constant 0 : i32
    %c0_i32_0 = arith.constant 0 : i32
    %c0_i32_1 = arith.constant 0 : i32
    return %c0_i32, %c0_i32_0 : i32, i32
  }
  func.func @transform_9(%arg0: i32) -> (i32, i32) {
    %c0_i32 = arith.constant 0 : i32
    %c0_i32_0 = arith.constant 0 : i32
    %c0_i32_1 = arith.constant 0 : i32
    return %c0_i32, %c0_i32_0 : i32, i32
  }
  func.func @transform_10(%arg0: i32) -> (i32, i32) {
    %c0_i32 = arith.constant 0 : i32
    %c0_i32_0 = arith.constant 0 : i32
    return %arg0, %c0_i32 : i32, i32
  }
  func.func @transform_11(%arg0: i32) -> (i32, i32) {
    %c0_i32 = arith.constant 0 : i32
    %c0_i32_0 = arith.constant 0 : i32
    return %arg0, %c0_i32 : i32, i32
  }
}

</mosaic_0001>

<bundles_post_ra>
// kernel: vae_forward_prepared.1
= control target key start
LH: loop header
LB: loop body
LE: loop exit
PB: predicated region body
PF: predicated region fallthrough
CT: control target
= control target key end

     0   :  { %17 = vsyncpa [#allocation3], 0  ;;  %s1175_s0 = inlined_call_operand.vmem [shape: f32[8,128], index: 0, kind: input, shape index: {}]   ;;  %s1176_s1 = inlined_call_operand.vmem [shape: f32[8,128], index: 1, kind: input, shape index: {}]   ;;  %s1177_s2 = inlined_call_operand.hbm [shape: f32[128,128], index: 2, kind: input, shape index: {}]   ;;  %s1178_s3 = inlined_call_operand.vmem [shape: f32[1,128], index: 3, kind: input, shape index: {}]   ;;  %s1179_s4 = inlined_call_operand.hbm [shape: f32[128,128], index: 4, kind: input, shape index: {}]   ;;  %s1180_s5 = inlined_call_operand.vmem [shape: f32[1,128], index: 5, kind: input, shape index: {}]   ;;  %s1181_s6 = inlined_call_operand.hbm [shape: f32[128,128], index: 6, kind: input, shape index: {}]   ;;  %s1182_s7 = inlined_call_operand.vmem [shape: f32[1,128], index: 7, kind: input, shape index: {}]   ;;  %s1183_s8 = inlined_call_operand.hbm [shape: f32[128,128], index: 8, kind: input, shape index: {}]   ;;  %s1184_s9 = inlined_call_operand.vmem [shape: f32[1,128], index: 9, kind: input, shape index: {}]   ;;  %s1185_s10 = inlined_call_operand.hbm [shape: f32[8,128], index: 10, kind: output, shape index: {0}]   ;;  %s1186_s11 = inlined_call_operand.vmem [shape: f32[8,128], index: 11, kind: output, shape index: {1}]  }
   0x1   :  { %18 = vsyncpa [#allocation6], 0 }
   0x2   :  { %19 = vsyncpa [#allocation9], 0 }
   0x3   :  { %20 = vsyncpa [#allocation4], 0  ;;  %s957_s17 = smov [#allocation5]   ;;  %s958_s19 = smov [#allocation2]  }
   0x4   :  { %s44_s18 = sshll.u32 %s957_s17, 4  ;;  %s30_s20 = sshll.u32 %s958_s19, 4  ;;  %s45_s18 = int_to_ptr.vmem [resolvable:$true] %s44_s18  ;;  %s1028_s20 = int_to_ptr.vmem [resolvable:$true] %s30_s20 }
   0x5   :  { %s839_s23 = scalar_lea.hbm %s1179_s4, 2048 }
   0x6   :  { %p840_p0 = scmp.ne.s32.totalorder %s1179_s4, %s839_s23  ;;  %p843_p1 = scmp.lt.u32.totalorder %s839_s23, %s1179_s4 }
   0x8   :  { %p845_p2 = pnand %p843_p1, %p840_p0 }
   0xa   :  { %848 = shalt.err (!%p845_p2)
}
   0xb   :  { %s849_s28 = scalar_lea.vmem %s45_s18, 2048  ;;  %p854_p4 = scmp.lt.s32.totalorder %s45_s18, %s45_s18 }
   0xc   :  { %p850_p3 = scmp.ne.s32.totalorder %s45_s18, %s849_s28  ;;  %p855_p5 = scmp.lt.s32.totalorder %s849_s28, %s849_s28 }
   0xe   :  { %p856_p6 = por %p855_p5, %p854_p4 }
  0x10   :  { %p857_p7 = pnand %p856_p6, %p850_p3 }
  0x12   :  { %860 = shalt.err (!%p857_p7)
}
  0x13   :  { %s959_s29 = smov 128   ;;  %s960_s30 = smov 8  }
  0x14   :  { %50 = dma.hbm_to_vmem [thread:$0]  %s1179_s4, 2048, %s45_s18, [#allocation6], %s959_s29, %s959_s29, %s960_s30  }
  0x15   :  { %s861_s16 = scalar_lea.hbm %s1177_s2, 2048 }
  0x16   :  { %p862_p8 = scmp.ne.s32.totalorder %s1177_s2, %s861_s16  ;;  %p865_p9 = scmp.lt.u32.totalorder %s861_s16, %s1177_s2 }
  0x18   :  { %p867_p10 = pnand %p865_p9, %p862_p8 }
  0x1a   :  { %870 = shalt.err (!%p867_p10)
}
  0x1b   :  { %s871_s23 = scalar_lea.vmem %s1028_s20, 2048  ;;  %p876_p12 = scmp.lt.s32.totalorder %s1028_s20, %s1028_s20 }
  0x1c   :  { %p872_p11 = scmp.ne.s32.totalorder %s1028_s20, %s871_s23  ;;  %p877_p13 = scmp.lt.s32.totalorder %s871_s23, %s871_s23 }
  0x1e   :  { %p878_p0 = por %p877_p13, %p876_p12 }
  0x20   :  { %p879_p1 = pnand %p878_p0, %p872_p11 }
  0x22   :  { %882 = shalt.err (!%p879_p1)
}
  0x23   :  { %36 = dma.hbm_to_vmem [thread:$0]  %s1177_s2, 2048, %s1028_s20, [#allocation3], %s959_s29, %s959_s29, %s960_s30  }
  0x24   :  { %s961_s24 = smov [#allocation7]   ;;  %s962_s26 = smov [#allocation8]  }
  0x25   :  { %s58_s25 = sshll.u32 %s961_s24, 4  ;;  %s72_s27 = sshll.u32 %s962_s26, 4  ;;  %s59_s25 = int_to_ptr.vmem [resolvable:$true] %s58_s25  ;;  %s1065_s27 = int_to_ptr.vmem [resolvable:$true] %s72_s27 }
  0x26   :  { %s883_s13 = scalar_lea.hbm %s1181_s6, 2048 }
  0x27   :  { %p884_p2 = scmp.ne.s32.totalorder %s1181_s6, %s883_s13  ;;  %p887_p3 = scmp.lt.u32.totalorder %s883_s13, %s1181_s6 }
  0x29   :  { %p889_p4 = pnand %p887_p3, %p884_p2 }
  0x2b   :  { %892 = shalt.err (!%p889_p4)
}
  0x2c   :  { %s893_s2 = scalar_lea.vmem %s59_s25, 2048  ;;  %p898_p6 = scmp.lt.s32.totalorder %s59_s25, %s59_s25 }
  0x2d   :  { %p894_p5 = scmp.ne.s32.totalorder %s59_s25, %s893_s2  ;;  %p899_p7 = scmp.lt.s32.totalorder %s893_s2, %s893_s2 }
  0x2f   :  { %p900_p8 = por %p899_p7, %p898_p6 }
  0x31   :  { %p901_p9 = pnand %p900_p8, %p894_p5 }
  0x33   :  { %904 = shalt.err (!%p901_p9)
}
  0x34   :  { %64 = dma.hbm_to_vmem [thread:$0]  %s1181_s6, 2048, %s59_s25, [#allocation6], %s959_s29, %s959_s29, %s960_s30  }
  0x35   :  { %s905_s23 = scalar_lea.hbm %s1183_s8, 2048 }
  0x36   :  { %p906_p10 = scmp.ne.s32.totalorder %s1183_s8, %s905_s23  ;;  %p909_p11 = scmp.lt.u32.totalorder %s905_s23, %s1183_s8 }
  0x38   :  { %p911_p12 = pnand %p909_p11, %p906_p10 }
  0x3a   :  { %914 = shalt.err (!%p911_p12)
}
  0x3b   :  { %s915_s28 = scalar_lea.vmem %s1065_s27, 2048  ;;  %p920_p0 = scmp.lt.s32.totalorder %s1065_s27, %s1065_s27 }
  0x3c   :  { %p916_p13 = scmp.ne.s32.totalorder %s1065_s27, %s915_s28  ;;  %p921_p1 = scmp.lt.s32.totalorder %s915_s28, %s915_s28 }
  0x3e   :  { %p922_p2 = por %p921_p1, %p920_p0 }
  0x40   :  { %p923_p3 = pnand %p922_p2, %p916_p13 }
  0x42   :  { %926 = shalt.err (!%p923_p3)
}
  0x43   :  { %78 = dma.hbm_to_vmem [thread:$0]  %s1183_s8, 2048, %s1065_s27, [#allocation9], %s959_s29, %s959_s29, %s960_s30  }
  0x44   :  { %949 = dma.done.wait [#allocation3], 2048  }
  0x45   :  { %950 = vsyncadd [#allocation3], 4294965248 }
  0x46   :  { %951 = dma.done.wait [#allocation6], 4096  }
  0x47   :  { %952 = vsyncadd [#allocation6], 4294963200 }
  0x48   :  { %953 = dma.done.wait [#allocation9], 2048  }
  0x49   :  { %954 = vsyncadd [#allocation9], 4294965248  ;;  %v963_v0 = vmov 0.0|0.0   ;;  %vm964_vm0 = vmmov 0   ;;  %v965_v1 = vmov 0.0   ;;  %v95_v2 = vld [vmem:[#allocation2] sm:$0xff] }
  0x4a   :  { %722 = vmatprep.subr.bf16.mxu0 %v963_v0  ;;  %614 = vmatprep.mubr.msk.f32.mxu0 %vm964_vm0, %v965_v1  ;;  %v96_v3 = vld [vmem:[#allocation2 + $0x8] sm:$0xff]  ;;  %v97_v4 = vld [vmem:[#allocation2 + $0x10] sm:$0xff]  ;;  %v98_v6 = vld [vmem:[#allocation2 + $0x18] sm:$0xff]  ;;  %s966_s14 = smov 112   ;;  %s967_s2 = smov [#allocation10]  }
  0x4b   :  { %746 = vmatprep.subr.bf16.mxu1 %v963_v0  ;;  %649 = vmatprep.mubr.msk.f32.mxu1 %vm964_vm0, %v965_v1  ;;  %v723_v5 = vpack.c.bf16 %v96_v3, %v95_v2  ;;  %v726_v7 = vpack.c.bf16 %v98_v6, %v97_v4  ;;  %v99_v8 = vld [vmem:[#allocation2 + $0x20] sm:$0xff]  ;;  %v100_v9 = vld [vmem:[#allocation2 + $0x28] sm:$0xff]  ;;  %v191_v12 = vld [vmem:[#allocation5 + $0x10] sm:$0xff] }
  0x4c   :  { %v189_v10 = vld [vmem:[#allocation5] sm:$0xff]  ;;  %v190_v11 = vld [vmem:[#allocation5 + $0x8] sm:$0xff]  ;;  %v192_v13 = vld [vmem:[#allocation5 + $0x18] sm:$0xff]  ;;  %v729_v14 = vpack.c.bf16 %v100_v9, %v99_v8 }
  0x4d   :  { %724 = vmatpush3.bf16.msra.mxu0 %v723_v5  ;;  %v747_v15 = vpack.c.bf16 %v190_v11, %v189_v10  ;;  %v101_v16 = vld [vmem:[#allocation2 + $0x30] sm:$0xff]  ;;  %v102_v17 = vld [vmem:[#allocation2 + $0x38] sm:$0xff]  ;;  %v750_v18 = vpack.c.bf16 %v192_v13, %v191_v12  ;;  %v193_v19 = vld [vmem:[#allocation5 + $0x20] sm:$0xff] }
  0x4e   :  { %725 = vmatprep.subr.bf16.mxu0 %v963_v0  ;;  %v194_v20 = vld [vmem:[#allocation5 + $0x28] sm:$0xff]  ;;  %v732_v21 = vpack.c.bf16 %v102_v17, %v101_v16  ;;  %v103_v22 = vld [vmem:[#allocation2 + $0x40] sm:$0xff]  ;;  %v195_v25 = vld [vmem:[#allocation5 + $0x30] sm:$0xff] }
  0x4f   :  { %748 = vmatpush3.bf16.msra.mxu1 %v747_v15  ;;  %v104_v23 = vld [vmem:[#allocation2 + $0x48] sm:$0xff]  ;;  %v753_v24 = vpack.c.bf16 %v194_v20, %v193_v19  ;;  %v196_v26 = vld [vmem:[#allocation5 + $0x38] sm:$0xff]  ;;  %v105_v28 = vld [vmem:[#allocation2 + $0x50] sm:$0xff] }
  0x50   :  { %749 = vmatprep.subr.bf16.mxu1 %v963_v0  ;;  %v735_v27 = vpack.c.bf16 %v104_v23, %v103_v22  ;;  %v106_v29 = vld [vmem:[#allocation2 + $0x58] sm:$0xff]  ;;  %v756_v30 = vpack.c.bf16 %v196_v26, %v195_v25  ;;  %v197_v31 = vld [vmem:[#allocation5 + $0x40] sm:$0xff]  ;;  %v198_v32 = vld [vmem:[#allocation5 + $0x48] sm:$0xff] }
  0x51   :  { %727 = vmatpush3.bf16.msra.mxu0 %v726_v7  ;;  %v738_v33 = vpack.c.bf16 %v106_v29, %v105_v28  ;;  %v107_v34 = vld [vmem:[#allocation2 + $0x60] sm:$0xff]  ;;  %v108_v35 = vld [vmem:[#allocation2 + $0x68] sm:$0xff]  ;;  %v759_v36 = vpack.c.bf16 %v198_v32, %v197_v31  ;;  %v109_v38 = vld [vmem:[#allocation2 + $0x70] sm:$0xff] }
  0x52   :  { %728 = vmatprep.subr.bf16.mxu0 %v963_v0  ;;  %v741_v37 = vpack.c.bf16 %v108_v35, %v107_v34  ;;  %v110_v39 = vld [vmem:[#allocation2 + $0x78] sm:$0xff]  ;;  %v93_v41 = vld [vmem:[%s1175_s0] sm:$0xff]  ;;  %v199_v42 = vld [vmem:[#allocation5 + $0x50] sm:$0xff] }
  0x53   :  { %751 = vmatpush3.bf16.msra.mxu1 %v750_v18  ;;  %v744_v40 = vpack.c.bf16 %v110_v39, %v109_v38  ;;  %v200_v43 = vld [vmem:[#allocation5 + $0x58] sm:$0xff]  ;;  %v201_v45 = vld [vmem:[#allocation5 + $0x60] sm:$0xff]  ;;  %v202_v46 = vld [vmem:[#allocation5 + $0x68] sm:$0xff] }
  0x54   :  { %752 = vmatprep.subr.bf16.mxu1 %v963_v0  ;;  %v762_v44 = vpack.c.bf16 %v200_v43, %v199_v42  ;;  %v765_v47 = vpack.c.bf16 %v202_v46, %v201_v45  ;;  %v203_v48 = vld [vmem:[#allocation5 + $0x70] sm:$0xff]  ;;  %v204_v49 = vld [vmem:[#allocation5 + $0x78] sm:$0xff]  ;;  %v509_v51 = vld [vmem:[%s1178_s3] ss:$0 sm:$0xff] }
  0x55   :  { %730 = vmatpush3.bf16.msra.mxu0 %v729_v14  ;;  %v768_v50 = vpack.c.bf16 %v204_v49, %v203_v48  ;;  %v293_v56 = vld [vmem:[#allocation7] sm:$0xff]  ;;  %v294_v57 = vld [vmem:[#allocation7 + $0x8] sm:$0xff]  ;;  %v295_v58 = vld [vmem:[#allocation7 + $0x10] sm:$0xff] }
  0x56   :  { %731 = vmatprep.subr.bf16.mxu0 %v963_v0  ;;  %v771_v59 = vpack.c.bf16 %v294_v57, %v293_v56  ;;  %v296_v60 = vld [vmem:[#allocation7 + $0x18] sm:$0xff]  ;;  %v297_v62 = vld [vmem:[#allocation7 + $0x20] sm:$0xff]  ;;  %v298_v63 = vld [vmem:[#allocation7 + $0x28] sm:$0xff] }
  0x57   :  { %754 = vmatpush3.bf16.msra.mxu1 %v753_v24  ;;  %v774_v61 = vpack.c.bf16 %v296_v60, %v295_v58  ;;  %v777_v2 = vpack.c.bf16 %v298_v63, %v297_v62  ;;  %v299_v3 = vld [vmem:[#allocation7 + $0x30] sm:$0xff]  ;;  %v301_v5 = vld [vmem:[#allocation7 + $0x40] sm:$0xff]  ;;  %v302_v6 = vld [vmem:[#allocation7 + $0x48] sm:$0xff] }
  0x58   :  { %755 = vmatprep.subr.bf16.mxu1 %v963_v0  ;;  %v783_v7 = vpack.c.bf16 %v302_v6, %v301_v5  ;;  %v303_v8 = vld [vmem:[#allocation7 + $0x50] sm:$0xff]  ;;  %v304_v9 = vld [vmem:[#allocation7 + $0x58] sm:$0xff]  ;;  %v305_v11 = vld [vmem:[#allocation7 + $0x60] sm:$0xff] }
  0x59   :  { %733 = vmatpush3.bf16.msra.mxu0 %v732_v21  ;;  %v786_v10 = vpack.c.bf16 %v304_v9, %v303_v8  ;;  %v306_v12 = vld [vmem:[#allocation7 + $0x68] sm:$0xff]  ;;  %v510_v13 = vld [vmem:[%s1180_s5] ss:$0 sm:$0xff]  ;;  %v307_v16 = vld [vmem:[#allocation7 + $0x70] sm:$0xff] }
  0x5a   :  { %734 = vmatprep.subr.bf16.mxu0 %v963_v0  ;;  %v789_v14 = vpack.c.bf16 %v306_v12, %v305_v11  ;;  %v308_v17 = vld [vmem:[#allocation7 + $0x78] sm:$0xff]  ;;  %v387_v21 = vld [vmem:[#allocation8] sm:$0xff]  ;;  %v388_v22 = vld [vmem:[#allocation8 + $0x8] sm:$0xff] }
  0x5b   :  { %757 = vmatpush3.bf16.msra.mxu1 %v756_v30  ;;  %v792_v20 = vpack.c.bf16 %v308_v17, %v307_v16  ;;  %v389_v23 = vld [vmem:[#allocation8 + $0x10] sm:$0xff]  ;;  %v795_v24 = vpack.c.bf16 %v388_v22, %v387_v21  ;;  %v390_v25 = vld [vmem:[#allocation8 + $0x18] sm:$0xff]  ;;  %v392_v28 = vld [vmem:[#allocation8 + $0x28] sm:$0xff] }
  0x5c   :  { %758 = vmatprep.subr.bf16.mxu1 %v963_v0  ;;  %v798_v26 = vpack.c.bf16 %v390_v25, %v389_v23  ;;  %v393_v30 = vld [vmem:[#allocation8 + $0x30] sm:$0xff]  ;;  %v394_v31 = vld [vmem:[#allocation8 + $0x38] sm:$0xff]  ;;  %v396_v34 = vld [vmem:[#allocation8 + $0x48] sm:$0xff] }
  0x5d   :  { %736 = vmatpush3.bf16.msra.mxu0 %v735_v27  ;;  %v391_v27 = vld [vmem:[#allocation8 + $0x20] sm:$0xff]  ;;  %v804_v32 = vpack.c.bf16 %v394_v31, %v393_v30  ;;  %v397_v46 = vld [vmem:[#allocation8 + $0x50] sm:$0xff] }
  0x5e   :  { %737 = vmatprep.subr.bf16.mxu0 %v963_v0  ;;  %v801_v29 = vpack.c.bf16 %v392_v28, %v391_v27  ;;  %v94_v42 = vld [vmem:[%s1176_s1] sm:$0xff] }
  0x5f   :  { %760 = vmatpush3.bf16.msra.mxu1 %v759_v36  ;;  %v284_v36 = vlaneseq  ;;  %v399_v49 = vld [vmem:[#allocation8 + $0x60] sm:$0xff] }
  0x60   :  { %761 = vmatprep.subr.bf16.mxu1 %v963_v0  ;;  %v512_v60 = vld [vmem:[%s1184_s9] ss:$0 sm:$0xff] }
  0x61   :  { %739 = vmatpush3.bf16.msra.mxu0 %v738_v33  ;;  %v395_v33 = vld [vmem:[#allocation8 + $0x40] sm:$0xff] }
  0x62   :  { %740 = vmatprep.subr.bf16.mxu0 %v963_v0  ;;  %v807_v35 = vpack.c.bf16 %v396_v34, %v395_v33 }
  0x63   :  { %763 = vmatpush3.bf16.msra.mxu1 %v762_v44 }
  0x64   :  { %764 = vmatprep.subr.bf16.mxu1 %v963_v0 }
  0x65   :  { %742 = vmatpush3.bf16.msra.mxu0 %v741_v37  ;;  %v285_v37 = vand.u32 127, %v284_v36 }
  0x66   :  { %743 = vmatprep.subr.bf16.mxu0 %v963_v0 }
  0x67   :  { %766 = vmatpush3.bf16.msra.mxu1 %v765_v47  ;;  %vm286_vm1 = vcmp.lt.s32.totalorder %v285_v37, 16  ;;  %v398_v47 = vld [vmem:[#allocation8 + $0x58] sm:$0xff] }
  0x68   :  { %767 = vmatprep.subr.bf16.mxu1 %v963_v0  ;;  %v810_v48 = vpack.c.bf16 %v398_v47, %v397_v46 }
  0x69   :  { %745 = vmatpush3.bf16.msra.mxu0 %v744_v40 }
  0x6a   :  { %770 = vmatprep.subr.bf16.mxu0 %v963_v0 }
  0x6b   :  { %769 = vmatpush3.bf16.msra.mxu1 %v768_v50  ;;  %v400_v50 = vld [vmem:[#allocation8 + $0x68] sm:$0xff] }
  0x6c   :  { %615 = vmatmul.mubr.f32.vlgmr.msra.gmra.mrb[0].mxu0 %v93_v41  ;;  %794 = vmatprep.subr.bf16.mxu1 %v963_v0 }
  0x6d   :  { %684 = vmatprep.mubr.msk.f32.mxu0 %vm964_vm0, %v965_v1  ;;  %772 = vmatpush3.bf16.msra.mxu0 %v771_v59 }
  0x6e   :  { %773 = vmatprep.subr.bf16.mxu0 %v963_v0 }
  0x71   :  { %775 = vmatpush3.bf16.msra.mxu0 %v774_v61 }
  0x72   :  { %776 = vmatprep.subr.bf16.mxu0 %v963_v0 }
  0x75   :  { %778 = vmatpush3.bf16.msra.mxu0 %v777_v2 }
  0x76   :  { %779 = vmatprep.subr.bf16.mxu0 %v963_v0 }
 0x13f   :  { %v184_v52 = vpop.f32.mrb[0].mxu0 }
 0x140   :  { %v185_v53 = vadd.f32 %v509_v51, %v184_v52  ;;  %v616_v54 = vpop.f32.mrb[1].mxu0  ;;  %v813_v51 = vpack.c.bf16 %v400_v50, %v399_v49  ;;  %v401_v52 = vld [vmem:[#allocation8 + $0x70] sm:$0xff] }
 0x142   :  { %829 = vtanh.f32 %v185_v53  ;;  %v402_v53 = vld [vmem:[#allocation8 + $0x78] sm:$0xff] }
 0x143   :  { %v816_v54 = vpack.c.bf16 %v402_v53, %v401_v52 }
 0x14c   :  { %v830_v55 = vpop.eup %829 }
 0x14d   :  { %650 = vmatmul.mubr.f32.vlgmr.msra.gmra.mrb[0].mxu1 %v830_v55  ;;  %v511_v55 = vld [vmem:[%s1182_s7] ss:$0 sm:$0xff]  ;;  %s494_s7 = sshll.u32 %s967_s2, 4  ;;  %s495_s7 = int_to_ptr.vmem [resolvable:$true] %s494_s7 }
 0x14e   :  { %719 = vmatprep.mubr.msk.f32.mxu1 %vm964_vm0, %v965_v1  ;;  %v300_v1 = vld [vmem:[#allocation7 + $0x38] sm:$0xff]  ;;  %796 = vmatpush3.bf16.msra.mxu1 %v795_v24  ;;  %s927_s20 = scalar_lea.vmem %s495_s7, 128  ;;  %p932_p5 = scmp.lt.s32.totalorder %s495_s7, %s495_s7 }
 0x14f   :  { %v780_v4 = vpack.c.bf16 %v300_v1, %v299_v3  ;;  %797 = vmatprep.subr.bf16.mxu1 %v963_v0  ;;  %p928_p4 = scmp.ne.s32.totalorder %s495_s7, %s927_s20  ;;  %p933_p6 = scmp.lt.s32.totalorder %s927_s20, %s927_s20 }
 0x151   :  { %781 = vmatpush3.bf16.msra.mxu0 %v780_v4  ;;  %p934_p7 = por %p933_p6, %p932_p5 }
 0x152   :  { %782 = vmatprep.subr.bf16.mxu0 %v963_v0  ;;  %799 = vmatpush3.bf16.msra.mxu1 %v798_v26 }
 0x153   :  { %800 = vmatprep.subr.bf16.mxu1 %v963_v0  ;;  %p935_p8 = pnand %p934_p7, %p928_p4 }
 0x155   :  { %784 = vmatpush3.bf16.msra.mxu0 %v783_v7 }
 0x156   :  { %785 = vmatprep.subr.bf16.mxu0 %v963_v0  ;;  %802 = vmatpush3.bf16.msra.mxu1 %v801_v29 }
 0x157   :  { %803 = vmatprep.subr.bf16.mxu1 %v963_v0 }
 0x159   :  { %787 = vmatpush3.bf16.msra.mxu0 %v786_v10 }
 0x15a   :  { %788 = vmatprep.subr.bf16.mxu0 %v963_v0  ;;  %805 = vmatpush3.bf16.msra.mxu1 %v804_v32 }
 0x15b   :  { %806 = vmatprep.subr.bf16.mxu1 %v963_v0 }
 0x15d   :  { %790 = vmatpush3.bf16.msra.mxu0 %v789_v14 }
 0x15e   :  { %791 = vmatprep.subr.bf16.mxu0 %v963_v0  ;;  %808 = vmatpush3.bf16.msra.mxu1 %v807_v35 }
 0x15f   :  { %809 = vmatprep.subr.bf16.mxu1 %v963_v0 }
 0x161   :  { %793 = vmatpush3.bf16.msra.mxu0 %v792_v20 }
 0x162   :  { %811 = vmatpush3.bf16.msra.mxu1 %v810_v48 }
 0x163   :  { %812 = vmatprep.subr.bf16.mxu1 %v963_v0 }
 0x166   :  { %814 = vmatpush3.bf16.msra.mxu1 %v813_v51 }
 0x167   :  { %815 = vmatprep.subr.bf16.mxu1 %v963_v0 }
 0x16a   :  { %817 = vmatpush3.bf16.msra.mxu1 %v816_v54 }
 0x220   :  { %v278_v15 = vpop.f32.mrb[0].mxu1 }
 0x221   :  { %v279_v18 = vadd.f32 %v510_v13, %v278_v15  ;;  %v651_v19 = vpop.f32.mrb[1].mxu1 }
 0x223   :  { %487 = vst [vmem:[%s1186_s11] sm:$0xff] %v279_v18  ;;  %282 = vrot.lane.b32.xlu0 %v279_v18, %s966_s14 }
 0x295   :  { %v283_v38 = vpop.permute.xlu0 %282 }
 0x296   :  { %v287_v39 = vsel %vm286_vm1, %v283_v38, 0.0 }
 0x297   :  { %v288_v40 = vmul.f32 0.5, %v287_v39 }
 0x299   :  { %v289_v41 = vmul.f32 1.442695, %v288_v40 }
 0x29b   :  { %831 = vpow2.f32 %v289_v41 }
 0x2a5   :  { %v832_v43 = vpop.eup %831 }
 0x2a6   :  { %v291_v44 = vmul.f32 %v832_v43, %v94_v42 }
 0x2a8   :  { %v292_v45 = vadd.f32 %v291_v44, %v279_v18 }
 0x2aa   :  { %685 = vmatmul.mubr.f32.vlgmr.msra.gmra.mrb[2].mxu0 %v292_v45 }
 0x37d   :  { %v382_v56 = vpop.f32.mrb[2].mxu0 }
 0x37e   :  { %v383_v57 = vadd.f32 %v511_v55, %v382_v56  ;;  %v686_v58 = vpop.f32.mrb[3].mxu0 }
 0x380   :  { %833 = vtanh.f32 %v383_v57 }
 0x38a   :  { %v834_v59 = vpop.eup %833 }
 0x38b   :  { %720 = vmatmul.mubr.f32.vlgmr.msra.gmra.mrb[2].mxu1 %v834_v59 }
 0x45e   :  { %v476_v61 = vpop.f32.mrb[2].mxu1 }
 0x45f   :  { %v477_v62 = vadd.f32 %v512_v60, %v476_v61  ;;  %v721_v63 = vpop.f32.mrb[3].mxu1 }
 0x461   :  { %v513_v2 = vmul.f32 -1.442695, %v477_v62 }
 0x463   :  { %835 = vpow2.f32 %v513_v2 }
 0x46d   :  { %v836_v0 = vpop.eup %835 }
 0x46e   :  { %v483_v3 = vadd.f32 1.0, %v836_v0 }
 0x470   :  { %837 = vrcp.f32 %v483_v3 }
 0x47a   :  { %v838_v1 = vpop.eup %837 }
 0x47b   :  { %486 = vst [vmem:[#allocation10] sm:$0xff] %v838_v1 }
 0x47c   :  { %938 = shalt.err (!%p935_p8)
}
 0x47d   :  { %s939_s21 = scalar_lea.hbm %s1185_s10, 128 }
 0x47e   :  { %p940_p9 = scmp.ne.s32.totalorder %s1185_s10, %s939_s21  ;;  %p943_p10 = scmp.lt.u32.totalorder %s939_s21, %s1185_s10 }
 0x480   :  { %p945_p11 = pnand %p943_p10, %p940_p9 }
 0x482   :  { %948 = shalt.err (!%p945_p11)
}
 0x483   :  { %497 = dma.vmem_to_hbm [thread:$0]  %s495_s7, 128, %s1185_s10, [#allocation4]  }
 0x484   :  { %955 = dma.done.wait [#allocation4], 128  }
 0x485   :  { %956 = vsyncadd [#allocation4], 4294967168 }
 0x486   :  { %505 = vsyncpa [#allocation3], 1 }
 0x487   :  { %506 = vsyncpa [#allocation6], 1 }
 0x488   :  { %507 = vsyncpa [#allocation9], 1 }
 0x489   :  { %508 = vsyncpa [#allocation4], 1 }

</bundles_post_ra>
